<compile_context>
chip_gen: v5e
topology: v5e:2x2
jax: 0.10.0
libtpu: 0.0.40
codegen_flags: <defaults>
</compile_context>

<pallas_src>
import math
import jax
import jax.numpy as jnp
from jax import lax
from jax.experimental import pallas as pl
from jax.experimental.pallas import tpu as pltpu

D_IN = 64
D_OUT = 8
SEQ = 8                       # must equal D_OUT for the forward to be well-formed
SCALE = 1.0 / math.sqrt(D_OUT)


def _attn_kernel(x_ref, w_ref, b_ref, o_ref):
    x = x_ref[...]                                                   # (S, D_in)
    w = w_ref[...]                                                   # (D_in, 3*D_OUT) packed [q|k|v]
    b = b_ref[...]                                                   # (1, 3*D_OUT)   packed [q|k|v]

    # One fused MXU pass for all three projections.
    qkv = jnp.dot(x, w, preferred_element_type=jnp.float32) + b      # (S, 3*D_OUT)
    q = qkv[:, 0:D_OUT]
    k = qkv[:, D_OUT:2 * D_OUT]
    v = qkv[:, 2 * D_OUT:3 * D_OUT]
    bv = b[:, 2 * D_OUT:3 * D_OUT]                                   # (1, D_OUT) = v-bias

    # s[i, j] = sum_d q[i, d] * k[j, d]   (no explicit k.T)
    s = lax.dot_general(q, k, (((1,), (1,)), ((), ())),
                        preferred_element_type=jnp.float32) * SCALE
    # bias broadcast along the last axis (matches v.bias.unsqueeze(0).unsqueeze(1))
    s = s + bv

    # softmax over last axis
    m = jnp.max(s, axis=-1, keepdims=True)
    e = jnp.exp(s - m)
    p = e * pl.reciprocal(jnp.sum(e, axis=-1, keepdims=True), approx=True)

    # out[i, j] = sum_m p[m, i] * v[j, m]   (Keras batch_dot axes=(1, 2)), no .T needed
    o_ref[...] = lax.dot_general(p, v, (((0,), (1,)), ((), ())),
                                 preferred_element_type=jnp.float32)


def model_forward(x3, wq, bq, wk, bk, wv, bv):
    """x3: (B, S, D_in); w*: (D_out, D_in) torch layout; b*: (D_out,)."""
    B, S, Din = x3.shape
    assert B == 1 and S == SEQ and S == D_OUT and Din == D_IN

    # Host-side packing: one weight operand, one bias operand, one activation operand.
    w_qkv = jnp.concatenate([wq.T, wk.T, wv.T], axis=1)              # (D_in, 3*D_OUT)
    b_qkv = jnp.concatenate([bq, bk, bv]).reshape(1, 3 * D_OUT)      # (1, 3*D_OUT)

    cost = pl.CostEstimate(
        flops=2 * S * D_IN * 3 * D_OUT + 2 * 2 * S * S * D_OUT,      # ~27 KFLOP
        transcendentals=S * S + S,                                   # exp + reciprocal
        bytes_accessed=4 * (S * D_IN + D_IN * 3 * D_OUT + 3 * D_OUT + S * D_OUT),
    )

    out = pl.pallas_call(
        _attn_kernel,
        out_shape=jax.ShapeDtypeStruct((S, D_OUT), jnp.float32),
        in_specs=[pl.BlockSpec(memory_space=pltpu.MemorySpace.VMEM)] * 3,
        out_specs=pl.BlockSpec(memory_space=pltpu.MemorySpace.VMEM),
        cost_estimate=cost,
    )(x3[0], w_qkv, b_qkv)
    return out[None]                 # (1, S, D_OUT)


def _reference(x3, wq, bq, wk, bk, wv, bv):
    q = x3 @ wq.T + bq
    k = x3 @ wk.T + bk
    v = x3 @ wv.T + bv
    s = jnp.einsum("bik,bjk->bij", q, k) * SCALE
    s = s + bv[None, None, :]
    p = jax.nn.softmax(s, axis=-1)
    # Keras batch_dot(p, v, axes=(1, 2)): out[b, i, j] = sum_m p[b, m, i] * v[b, j, m]
    return jnp.einsum("bmi,bjm->bij", p, v)


if __name__ == "__main__":
    key = jax.random.PRNGKey(0)
    kx, kwq, kbq, kwk, kbk, kwv, kbv = jax.random.split(key, 7)
    bound = 1.0 / math.sqrt(D_IN)    # torch.nn.Linear default init bound
    x3 = jax.random.normal(kx, (1, SEQ, D_IN), dtype=jnp.float32)
    wq = jax.random.uniform(kwq, (D_OUT, D_IN), jnp.float32, -bound, bound)
    bq = jax.random.uniform(kbq, (D_OUT,), jnp.float32, -bound, bound)
    wk = jax.random.uniform(kwk, (D_OUT, D_IN), jnp.float32, -bound, bound)
    bk = jax.random.uniform(kbk, (D_OUT,), jnp.float32, -bound, bound)
    wv = jax.random.uniform(kwv, (D_OUT, D_IN), jnp.float32, -bound, bound)
    bv = jax.random.uniform(kbv, (D_OUT,), jnp.float32, -bound, bound)

    out = jax.block_until_ready(model_forward(x3, wq, bq, wk, bk, wv, bv))
    ref = jax.block_until_ready(_reference(x3, wq, bq, wk, bk, wv, bv))
    assert out.shape == (1, SEQ, D_OUT), out.shape
    assert jnp.allclose(out, ref, atol=2e-2, rtol=2e-2)
    print("KERNEL_OK")
</pallas_src>

<mosaic_0001>
module attributes {stable_mosaic.version = 11 : i64} {
  func.func @_attn_kernel(%arg0: memref<8x64xf32, #tpu.memory_space<vmem>>, %arg1: memref<64x24xf32, #tpu.memory_space<vmem>>, %arg2: memref<1x24xf32, #tpu.memory_space<vmem>>, %arg3: memref<8x8xf32, #tpu.memory_space<vmem>>) attributes {dimension_semantics = [], scalar_prefetch = 0 : i64, scratch_operands = 0 : i64, tpu.core_type = #tpu.core_type<tc>} {
    %c0 = arith.constant 0 : index
    %c0_0 = arith.constant 0 : index
    %0 = vector.load %arg0[%c0, %c0_0] : memref<8x64xf32, #tpu.memory_space<vmem>>, vector<8x64xf32>
    %c0_1 = arith.constant 0 : index
    %c0_2 = arith.constant 0 : index
    %1 = vector.load %arg1[%c0_1, %c0_2] : memref<64x24xf32, #tpu.memory_space<vmem>>, vector<64x24xf32>
    %c0_3 = arith.constant 0 : index
    %c0_4 = arith.constant 0 : index
    %2 = vector.load %arg2[%c0_3, %c0_4] : memref<1x24xf32, #tpu.memory_space<vmem>>, vector<1x24xf32>
    %cst = arith.constant dense<0.000000e+00> : vector<8x24xf32>
    %3 = tpu.matmul %0, %1, %cst {dimension_numbers = #tpu.dot_dimension_numbers<[1], [0], [0], [1], [0, 0, 1, 1], [], []>} : vector<8x64xf32>, vector<64x24xf32>, vector<8x24xf32> -> vector<8x24xf32>
    %4 = vector.broadcast %2 : vector<1x24xf32> to vector<8x24xf32>
    %5 = arith.addf %3, %4 : vector<8x24xf32>
    %6 = vector.extract_strided_slice %5 {offsets = [0, 0], sizes = [8, 8], strides = [1, 1]} : vector<8x24xf32> to vector<8x8xf32>
    %7 = vector.extract_strided_slice %5 {offsets = [0, 8], sizes = [8, 8], strides = [1, 1]} : vector<8x24xf32> to vector<8x8xf32>
    %8 = vector.extract_strided_slice %5 {offsets = [0, 16], sizes = [8, 8], strides = [1, 1]} : vector<8x24xf32> to vector<8x8xf32>
    %9 = vector.extract_strided_slice %2 {offsets = [0, 16], sizes = [1, 8], strides = [1, 1]} : vector<1x24xf32> to vector<1x8xf32>
    %cst_5 = arith.constant dense<0.000000e+00> : vector<8x8xf32>
    %10 = tpu.matmul %6, %7, %cst_5 {dimension_numbers = #tpu.dot_dimension_numbers<[1], [1], [0], [0], [0, 0, 1, 0], [], []>} : vector<8x8xf32>, vector<8x8xf32>, vector<8x8xf32> -> vector<8x8xf32>
    %cst_6 = arith.constant 0.353553385 : f32
    %11 = vector.broadcast %cst_6 : f32 to vector<8x8xf32>
    %12 = arith.mulf %10, %11 : vector<8x8xf32>
    %13 = vector.broadcast %9 : vector<1x8xf32> to vector<8x8xf32>
    %14 = arith.addf %12, %13 : vector<8x8xf32>
    %cst_7 = arith.constant dense<0xFF800000> : vector<8xf32>
    %15 = vector.multi_reduction <maximumf>, %14, %cst_7 [1] : vector<8x8xf32> to vector<8xf32>
    %16 = vector.shape_cast %15 : vector<8xf32> to vector<8x1xf32>
    %17 = vector.broadcast %16 : vector<8x1xf32> to vector<8x8xf32>
    %18 = arith.subf %14, %17 : vector<8x8xf32>
    %19 = math.exp %18 : vector<8x8xf32>
    %cst_8 = arith.constant dense<0.000000e+00> : vector<8xf32>
    %20 = vector.multi_reduction <add>, %19, %cst_8 [1] : vector<8x8xf32> to vector<8xf32>
    %21 = vector.shape_cast %20 : vector<8xf32> to vector<8x1xf32>
    %22 = tpu.reciprocal %21 {approx = true} : vector<8x1xf32> -> vector<8x1xf32>
    %23 = vector.broadcast %22 : vector<8x1xf32> to vector<8x8xf32>
    %24 = arith.mulf %19, %23 : vector<8x8xf32>
    %cst_9 = arith.constant dense<0.000000e+00> : vector<8x8xf32>
    %25 = tpu.matmul %24, %8, %cst_9 {dimension_numbers = #tpu.dot_dimension_numbers<[0], [1], [1], [0], [0, 1, 1, 0], [], []>} : vector<8x8xf32>, vector<8x8xf32>, vector<8x8xf32> -> vector<8x8xf32>
    %c0_10 = arith.constant 0 : index
    %c0_11 = arith.constant 0 : index
    %26 = vector.load %arg3[%c0_10, %c0_11] : memref<8x8xf32, #tpu.memory_space<vmem>>, vector<8x8xf32>
    tpu.vector_store %arg3[%c0_10, %c0_11], %25 {strides = array<i32>} : memref<8x8xf32, #tpu.memory_space<vmem>>, vector<8x8xf32>,
    return
  }
}

</mosaic_0001>

<bundles_post_ra>
// kernel: tpu_custom_call.1
= control target key start
LH: loop header
LB: loop body
LE: loop exit
PB: predicated region body
PF: predicated region fallthrough
CT: control target
= control target key end

     0   :  { %s275_s0 = inlined_call_operand.vmem [shape: f32[8,64], index: 0, kind: input, shape index: {}]   ;;  %s276_s1 = inlined_call_operand.vmem [shape: f32[64,24], index: 1, kind: input, shape index: {}]   ;;  %s277_s2 = inlined_call_operand.vmem [shape: f32[1,24], index: 2, kind: input, shape index: {}]   ;;  %s278_s3 = inlined_call_operand.hbm [shape: f32[8,8], index: 3, kind: output, shape index: {}]  }
   0x1   :  { %v23_v0 = vld [vmem:[%s276_s1 + $0x38] sm:$0xff]  ;;  %v22_v1 = vld [vmem:[%s276_s1 + $0x30] sm:$0xff]  ;;  %v21_v2 = vld [vmem:[%s276_s1 + $0x28] sm:$0xff] }
   0x2   :  { %40 = vmatpush.msra.mxu0 %v23_v0 }
   0x4   :  { %41 = vmatpush.msra.mxu0 %v22_v1 }
   0x5   :  { %8 = vsyncpa [#allocation3], 0  ;;  %v20_v3 = vld [vmem:[%s276_s1 + $0x20] sm:$0xff]  ;;  %v19_v4 = vld [vmem:[%s276_s1 + $0x18] sm:$0xff]  ;;  %vm28_vm0 = vcmask 523264   ;;  %s212_s5 = smov 112  }
   0x6   :  { %42 = vmatpush.msra.mxu0 %v21_v2  ;;  %v18_v5 = vld [vmem:[%s276_s1 + $0x10] sm:$0xff]  ;;  %v17_v6 = vld [vmem:[%s276_s1 + $0x8] sm:$0xff]  ;;  %v16_v7 = vld [vmem:[%s276_s1] sm:$0xff]  ;;  %s213_s6 = smov 120   ;;  %vm55_vm1 = vcmask 64512   ;;  %s163_s8 = sshll.u32 %s278_s3, 4  ;;  %s164_s8 = int_to_ptr.hbm [resolvable:$true] %s163_s8 }
   0x7   :  { %v15_v8 = vld [vmem:[%s275_s0] sm:$0xff]  ;;  %s214_s0 = smov [#allocation2]  }
   0x8   :  { %43 = vmatpush.msra.mxu0 %v20_v3  ;;  %v181_v9 = vld [vmem:[%s277_s2] ss:$0 sm:$0xff]  ;;  %s161_s1 = sshll.u32 %s214_s0, 4  ;;  %s162_s1 = int_to_ptr.vmem [resolvable:$true] %s161_s1 }
   0xa   :  { %44 = vmatpush.msra.mxu0 %v19_v4 }
   0xc   :  { %45 = vmatpush.msra.mxu0 %v18_v5 }
   0xe   :  { %46 = vmatpush.msra.mxu0 %v17_v6 }
  0x10   :  { %47 = vmatpush.msra.mxu0 %v16_v7 }
  0x11   :  { %172 = vmatmul.msk.f32.vlgmr.msra.gmra.mxu0 %vm28_vm0, %v15_v8 }
  0x8e   :  { %v49_v10 = vpop.f32.mrf.mxu0 }
  0x8f   :  { %v50_v11 = vadd.f32 %v181_v9, %v49_v10 }
  0x91   :  { %128 = vrot.lane.b32.xlu2 %v50_v11, %s212_s5  ;;  %53 = vrot.lane.b32.xlu0 %v50_v11, %s213_s6 }
  0x99   :  { %81 = vrot.lane.b32.xlu0 %v181_v9, %s212_s5 }
  0xeb   :  { %v129_v12 = vpop.permute.xlu2 %128 }
  0xec   :  { %175 = vmatpush.xpose.msk.msra.mxu2 %vm55_vm1, %v129_v12 }
 0x103   :  { %v54_v13 = vpop.permute.xlu0 %53 }
 0x104   :  { %173 = vmatpush.xpose.msk.msra.mxu1 %vm55_vm1, %v54_v13 }
 0x107   :  { %174 = vmatmul.msk.f32.vlgmr.msra.gmra.mxu1 %vm55_vm1, %v50_v11 }
 0x10b   :  { %v82_v15 = vpop.permute.xlu0 %81 }
 0x184   :  { %v77_v14 = vpop.f32.mrf.mxu1 }
 0x185   :  { %v80_v16 = vmul.f32 0.35355338, %v77_v14 }
 0x187   :  { %v84_v17 = vadd.f32 %v82_v15, %v80_v16 }
 0x189   :  { %v85_v18 = vsel %vm55_vm1, %v84_v17, -inf }
 0x18a   :  { %86 = vmax.xlane.f32.xlu1 %v85_v18 }
 0x1fd   :  { %v87_v19 = vpop.xlane.xlu1 %86 }
 0x1fe   :  { %v88_v20 = vsub.f32 %v84_v17, %v87_v19 }
 0x200   :  { %v89_v21 = vmul.f32 1.442695, %v88_v20 }
 0x202   :  { %182 = vpow2.f32 %v89_v21 }
 0x208   :  { %v183_v22 = vpop.eup %182 }
 0x209   :  { %v91_v23 = vsel %vm55_vm1, %v183_v22, 0.0 }
 0x20a   :  { %92 = vadd.xlane.f32.xlu1 %v91_v23 }
 0x27d   :  { %v93_v24 = vpop.xlane.xlu1 %92 }
 0x27e   :  { %184 = vrcp.f32 %v93_v24 }
 0x284   :  { %v185_v25 = vpop.eup %184 }
 0x285   :  { %v95_v26 = vmul.f32 %v185_v25, %v183_v22 }
 0x287   :  { %96 = vxpose.xlu2.b32.start.end [1/1] (short) (narrow) %v95_v26, 8 }
 0x320   :  { %v112_v27 = vpop.trf.xlu2 }
 0x321   :  { %176 = vmatmul.msk.f32.vlgmr.msra.gmra.mxu2 %vm55_vm1, %v112_v27 }
 0x3a4   :  { %v152_v28 = vpop.f32.mrf.mxu2 }
 0x3a5   :  { %155 = vst.msk [vmem:[#allocation2] sm:$0xff] %vm55_vm1, %v152_v28 }
 0x3a6   :  { %166 = dma.vmem_to_hbm [thread:$0]  %s162_s1, 128, %s164_s8, [#allocation3]  }
 0x3a7   :  { %210 = dma.done.wait [#allocation3], 128  }
 0x3a8   :  { %211 = vsyncadd [#allocation3], 4294967168 }
 0x3a9   :  { %171 = vsyncpa [#allocation3], 1 }

</bundles_post_ra>
